<compile_context>
chip_gen: v6e
topology: v6e:2x2x1
jax: 0.10.0
libtpu: 0.0.40
codegen_flags: <defaults>
</compile_context>

<pallas_src>
import functools

import jax
import jax.numpy as jnp
from jax.experimental import pallas as pl
from jax.experimental.pallas import tpu as pltpu

_LANE = 128


def _round_up(n, m):
    return (n + m - 1) // m * m


def _pad_to(a, shape):
    pads = [(0, s - d) for d, s in zip(a.shape, shape)]
    return jnp.pad(a, pads)


def _vmem_capacity_bytes():
    """Physical VMEM per TensorCore; conservative v7x fallback if query fails."""
    try:
        return int(pltpu.get_tpu_info().vmem_capacity_bytes)
    except Exception:
        return 64 * 1024 * 1024


def _invariant_spec(shape):
    """BlockSpec for a grid-invariant operand; single-buffered when supported."""
    index_map = lambda i: (0,) * len(shape)
    buffered = getattr(pl, "Buffered", None)
    if buffered is not None:
        try:
            return pl.BlockSpec(shape, index_map,
                                pipeline_mode=buffered(buffer_count=1))
        except Exception:
            pass
    return pl.BlockSpec(shape, index_map)


def _vmem_estimate_bytes(tm, K, Hp, Ap, W, w_bytes, out_bytes):
    # double-buffered streaming tiles (x in, out) ...
    io = 2 * tm * K * w_bytes + 2 * tm * Ap * out_bytes
    # ... single-buffered grid-invariant weights + f32 bias slab ...
    wts = (K * Hp + Hp * Hp + Hp * Ap) * w_bytes + 3 * W * 4
    # ... f32 intermediates (h1, h2, out accumulator).
    inter = (2 * tm * Hp + tm * Ap) * 4
    return io + wts + inter


def _mlp_kernel(x_ref, w1_ref, w2_ref, w3_ref, b_ref, o_ref):
    Hp = w1_ref.shape[1]
    Ap = w3_ref.shape[1]
    # Biases arrive as one (3, W) f32 slab; static slices are free.
    b1 = b_ref[0:1, :Hp]
    b2 = b_ref[1:2, :Hp]
    b3 = b_ref[2:3, :Ap]

    # layer1 + ReLU (MXU matmul, f32 accumulation; elementwise math stays f32)
    h1 = jnp.dot(x_ref[...], w1_ref[...], preferred_element_type=jnp.float32)
    h1 = jnp.maximum(h1 + b1, 0.0)
    # layer2 + ReLU
    h2 = jnp.dot(h1.astype(w2_ref.dtype), w2_ref[...],
                 preferred_element_type=jnp.float32)
    h2 = jnp.maximum(h2 + b2, 0.0)
    # layer3 (no activation)
    out = jnp.dot(h2.astype(w3_ref.dtype), w3_ref[...],
                  preferred_element_type=jnp.float32)
    o_ref[...] = (out + b3).astype(o_ref.dtype)


def pack_params(params, use_bf16=True):
    """Pad / cast / pack weights ONCE (hoisted out of the per-call path).

    params = (w1, b1, w2, b2, w3, b3); w_i is [in, out], b_i is [out].
    """
    w1, b1, w2, b2, w3, b3 = params
    n_state, H = w1.shape
    A = w3.shape[1]
    wdt = jnp.bfloat16 if use_bf16 else jnp.float32
    granule = 16 if use_bf16 else 8

    K = _round_up(n_state, granule)      # narrow contraction dim (NOT 128)
    Hp = _round_up(H, _LANE)             # hidden / action dims stay lane-dense
    Ap = _round_up(A, _LANE)
    W = max(Hp, Ap)

    w1_p = _pad_to(w1.astype(wdt), (K, Hp))
    w2_p = _pad_to(w2.astype(wdt), (Hp, Hp))
    w3_p = _pad_to(w3.astype(wdt), (Hp, Ap))
    b_all = jnp.stack(
        [_pad_to(b1.astype(jnp.float32), (W,)),
         _pad_to(b2.astype(jnp.float32), (W,)),
         _pad_to(b3.astype(jnp.float32), (W,))],
        axis=0)  # (3, W) f32, single lane-dense operand
    meta = dict(n_state=n_state, hidden=H, n_action=A, use_bf16=use_bf16)
    return (w1_p, w2_p, w3_p, b_all), meta


@functools.partial(jax.jit,
                   static_argnames=("n_action", "use_bf16", "block_b"))
def dqn_mlp_forward(x, packed, *, n_action, use_bf16=True, block_b=512):
    """x: [B, n_state]; packed from pack_params(); returns [B, n_action]."""
    w1_p, w2_p, w3_p, b_all = packed
    B, _ = x.shape
    K, Hp = w1_p.shape
    Ap = w3_p.shape[1]
    W = b_all.shape[1]
    out_dtype = x.dtype
    compute_dtype = jnp.bfloat16 if use_bf16 else jnp.float32
    granule = 16 if use_bf16 else 8      # packed-sublane alignment for bf16

    # ---- generation-aware VMEM policy -----------------------------------
    cap = _vmem_capacity_bytes()
    budget = int(cap * 0.78)             # ~100 MiB on v5e/v6e, ~50 MiB on v7x
    w_bytes = jnp.dtype(compute_dtype).itemsize
    out_bytes = jnp.dtype(out_dtype).itemsize

    def est(tm_):
        return _vmem_estimate_bytes(tm_, K, Hp, Ap, W, w_bytes, out_bytes)

    # ---- batch tiling: >=2 programs when possible (v7x megacore) --------
    if B <= granule:
        n_tiles = 1
    else:
        n_tiles = max(2, pl.cdiv(B, block_b))
    tm = _round_up(pl.cdiv(B, n_tiles), granule)
    while tm > granule and est(tm) > budget:
        tm = max(granule, _round_up(tm // 2, granule))
    Bp = _round_up(B, tm)
    grid = (Bp // tm,)

    # Only the activation is padded per call (zero padding is exact).
    x_p = _pad_to(x.astype(compute_dtype), (Bp, K))

    vmem_limit = min(cap - 8 * 1024 * 1024,
                     max(32 * 1024 * 1024, int(1.25 * est(tm))))

    cost = pl.CostEstimate(
        flops=2 * Bp * (K * Hp + Hp * Hp + Hp * Ap),
        transcendentals=0,
        bytes_accessed=(x_p.size * x_p.dtype.itemsize
                        + w1_p.size * w1_p.dtype.itemsize
                        + w2_p.size * w2_p.dtype.itemsize
                        + w3_p.size * w3_p.dtype.itemsize
                        + b_all.size * b_all.dtype.itemsize
                        + Bp * Ap * out_bytes))

    out_padded = pl.pallas_call(
        _mlp_kernel,
        out_shape=jax.ShapeDtypeStruct((Bp, Ap), out_dtype),
        grid=grid,
        in_specs=[
            pl.BlockSpec((tm, K), lambda i: (i, 0)),   # x: streamed over batch
            _invariant_spec((K, Hp)),                  # w1 (single-buffered)
            _invariant_spec((Hp, Hp)),                 # w2
            _invariant_spec((Hp, Ap)),                 # w3
            _invariant_spec((3, W)),                   # bias slab (f32)
        ],
        out_specs=pl.BlockSpec((tm, Ap), lambda i: (i, 0)),
        compiler_params=pltpu.CompilerParams(
            dimension_semantics=("parallel",),
            vmem_limit_bytes=vmem_limit,
        ),
        cost_estimate=cost,
    )(x_p, w1_p, w2_p, w3_p, b_all)

    # Slice back to the logical output shape outside the kernel.
    return out_padded[:B, :n_action]


def init_params(key, number_of_state, number_of_action, hidden_size):
    """PyTorch-style Linear init; weights stored [in, out], biases [out]."""
    ks = jax.random.split(key, 6)

    def linear(kw, kb, fan_in, fan_out):
        bound = 1.0 / jnp.sqrt(fan_in)
        w = jax.random.uniform(kw, (fan_in, fan_out), jnp.float32, -bound, bound)
        b = jax.random.uniform(kb, (fan_out,), jnp.float32, -bound, bound)
        return w, b

    w1, b1 = linear(ks[0], ks[1], number_of_state, hidden_size)
    w2, b2 = linear(ks[2], ks[3], hidden_size, hidden_size)
    w3, b3 = linear(ks[4], ks[5], hidden_size, number_of_action)
    return (w1, b1, w2, b2, w3, b3)


def _reference(x, params):
    w1, b1, w2, b2, w3, b3 = params
    h = jnp.maximum(x @ w1 + b1, 0.0)
    h = jnp.maximum(h @ w2 + b2, 0.0)
    return h @ w3 + b3


if __name__ == "__main__":
    number_of_state = 4
    number_of_action = 2
    hidden_size = 32
    batch = 2

    key = jax.random.PRNGKey(0)
    k_params, k_x = jax.random.split(key)
    params = init_params(k_params, number_of_state, number_of_action, hidden_size)
    x = jax.random.normal(k_x, (batch, number_of_state), jnp.float32)

    ref = _reference(x, params)

    # Exact-parity f32 path.
    packed_f32, _ = pack_params(params, use_bf16=False)
    out_f32 = jax.block_until_ready(
        dqn_mlp_forward(x, packed_f32, n_action=number_of_action, use_bf16=False))
    assert out_f32.shape == (batch, number_of_action)
    assert jnp.allclose(out_f32, ref, atol=1e-5, rtol=1e-5), "f32 mismatch vs reference"

    # Default fast path: bf16 storage, f32 accumulation (looser tolerance).
    packed_bf16, _ = pack_params(params, use_bf16=True)
    out_bf16 = jax.block_until_ready(
        dqn_mlp_forward(x, packed_bf16, n_action=number_of_action, use_bf16=True))
    assert out_bf16.shape == (batch, number_of_action)
    assert jnp.allclose(out_bf16, ref, atol=5e-2, rtol=5e-2), "bf16 mismatch vs reference"

    print("KERNEL_OK")
</pallas_src>

<mosaic_0001>
module attributes {stable_mosaic.version = 11 : i64} {
  func.func @_mlp_kernel(%arg0: i32, %arg1: memref<8x8xf32, #tpu.memory_space<vmem>>, %arg2: memref<8x128xf32, #tpu.memory_space<vmem>>, %arg3: memref<128x128xf32, #tpu.memory_space<vmem>>, %arg4: memref<128x128xf32, #tpu.memory_space<vmem>>, %arg5: memref<3x128xf32, #tpu.memory_space<vmem>>, %arg6: memref<8x128xf32, #tpu.memory_space<vmem>>) attributes {dimension_semantics = [#tpu.dimension_semantics<parallel>], iteration_bounds = array<i64: 1>, scalar_prefetch = 0 : i64, scratch_operands = 0 : i64, tpu.core_type = #tpu.core_type<tc>, window_params = [{transform_indices = @transform_0, window_bounds = array<i64: 8, 8>}, {pipeline_mode = #tpu.pipeline_mode<synchronous>, transform_indices = @transform_1, window_bounds = array<i64: 8, 128>}, {pipeline_mode = #tpu.pipeline_mode<synchronous>, transform_indices = @transform_2, window_bounds = array<i64: 128, 128>}, {pipeline_mode = #tpu.pipeline_mode<synchronous>, transform_indices = @transform_3, window_bounds = array<i64: 128, 128>}, {pipeline_mode = #tpu.pipeline_mode<synchronous>, transform_indices = @transform_4, window_bounds = array<i64: 3, 128>}, {transform_indices = @transform_5, window_bounds = array<i64: 8, 128>}]} {
    %c0 = arith.constant 0 : index
    %c0_0 = arith.constant 0 : index
    %0 = vector.load %arg5[%c0, %c0_0] : memref<3x128xf32, #tpu.memory_space<vmem>>, vector<1x128xf32>
    %c1 = arith.constant 1 : index
    %c0_1 = arith.constant 0 : index
    %1 = vector.load %arg5[%c1, %c0_1] : memref<3x128xf32, #tpu.memory_space<vmem>>, vector<1x128xf32>
    %c2 = arith.constant 2 : index
    %c0_2 = arith.constant 0 : index
    %2 = vector.load %arg5[%c2, %c0_2] : memref<3x128xf32, #tpu.memory_space<vmem>>, vector<1x128xf32>
    %c0_3 = arith.constant 0 : index
    %c0_4 = arith.constant 0 : index
    %3 = vector.load %arg1[%c0_3, %c0_4] : memref<8x8xf32, #tpu.memory_space<vmem>>, vector<8x8xf32>
    %c0_5 = arith.constant 0 : index
    %c0_6 = arith.constant 0 : index
    %4 = vector.load %arg2[%c0_5, %c0_6] : memref<8x128xf32, #tpu.memory_space<vmem>>, vector<8x128xf32>
    %cst = arith.constant dense<0.000000e+00> : vector<8x128xf32>
    %5 = tpu.matmul %3, %4, %cst {dimension_numbers = #tpu.dot_dimension_numbers<[1], [0], [0], [1], [0, 0, 1, 1], [], []>} : vector<8x8xf32>, vector<8x128xf32>, vector<8x128xf32> -> vector<8x128xf32>
    %6 = vector.broadcast %0 : vector<1x128xf32> to vector<8x128xf32>
    %7 = arith.addf %5, %6 : vector<8x128xf32>
    %cst_7 = arith.constant 0.000000e+00 : f32
    %8 = vector.broadcast %cst_7 : f32 to vector<8x128xf32>
    %9 = arith.maximumf %7, %8 : vector<8x128xf32>
    %c0_8 = arith.constant 0 : index
    %c0_9 = arith.constant 0 : index
    %10 = vector.load %arg3[%c0_8, %c0_9] : memref<128x128xf32, #tpu.memory_space<vmem>>, vector<128x128xf32>
    %cst_10 = arith.constant dense<0.000000e+00> : vector<8x128xf32>
    %11 = tpu.matmul %9, %10, %cst_10 {dimension_numbers = #tpu.dot_dimension_numbers<[1], [0], [0], [1], [0, 0, 1, 1], [], []>} : vector<8x128xf32>, vector<128x128xf32>, vector<8x128xf32> -> vector<8x128xf32>
    %12 = vector.broadcast %1 : vector<1x128xf32> to vector<8x128xf32>
    %13 = arith.addf %11, %12 : vector<8x128xf32>
    %cst_11 = arith.constant 0.000000e+00 : f32
    %14 = vector.broadcast %cst_11 : f32 to vector<8x128xf32>
    %15 = arith.maximumf %13, %14 : vector<8x128xf32>
    %c0_12 = arith.constant 0 : index
    %c0_13 = arith.constant 0 : index
    %16 = vector.load %arg4[%c0_12, %c0_13] : memref<128x128xf32, #tpu.memory_space<vmem>>, vector<128x128xf32>
    %cst_14 = arith.constant dense<0.000000e+00> : vector<8x128xf32>
    %17 = tpu.matmul %15, %16, %cst_14 {dimension_numbers = #tpu.dot_dimension_numbers<[1], [0], [0], [1], [0, 0, 1, 1], [], []>} : vector<8x128xf32>, vector<128x128xf32>, vector<8x128xf32> -> vector<8x128xf32>
    %18 = vector.broadcast %2 : vector<1x128xf32> to vector<8x128xf32>
    %19 = arith.addf %17, %18 : vector<8x128xf32>
    %c0_15 = arith.constant 0 : index
    %c0_16 = arith.constant 0 : index
    %20 = vector.load %arg6[%c0_15, %c0_16] : memref<8x128xf32, #tpu.memory_space<vmem>>, vector<8x128xf32>
    tpu.vector_store %arg6[%c0_15, %c0_16], %19 {strides = array<i32>} : memref<8x128xf32, #tpu.memory_space<vmem>>, vector<8x128xf32>,
    return
  }
  func.func @transform_0(%arg0: i32) -> (i32, i32) {
    %c0_i32 = arith.constant 0 : i32
    %c0_i32_0 = arith.constant 0 : i32
    return %arg0, %c0_i32 : i32, i32
  }
  func.func @transform_1(%arg0: i32) -> (i32, i32) {
    %c0_i32 = arith.constant 0 : i32
    %c0_i32_0 = arith.constant 0 : i32
    %c0_i32_1 = arith.constant 0 : i32
    return %c0_i32, %c0_i32_0 : i32, i32
  }
  func.func @transform_2(%arg0: i32) -> (i32, i32) {
    %c0_i32 = arith.constant 0 : i32
    %c0_i32_0 = arith.constant 0 : i32
    %c0_i32_1 = arith.constant 0 : i32
    return %c0_i32, %c0_i32_0 : i32, i32
  }
  func.func @transform_3(%arg0: i32) -> (i32, i32) {
    %c0_i32 = arith.constant 0 : i32
    %c0_i32_0 = arith.constant 0 : i32
    %c0_i32_1 = arith.constant 0 : i32
    return %c0_i32, %c0_i32_0 : i32, i32
  }
  func.func @transform_4(%arg0: i32) -> (i32, i32) {
    %c0_i32 = arith.constant 0 : i32
    %c0_i32_0 = arith.constant 0 : i32
    %c0_i32_1 = arith.constant 0 : i32
    return %c0_i32, %c0_i32_0 : i32, i32
  }
  func.func @transform_5(%arg0: i32) -> (i32, i32) {
    %c0_i32 = arith.constant 0 : i32
    %c0_i32_0 = arith.constant 0 : i32
    return %arg0, %c0_i32 : i32, i32
  }
}

</mosaic_0001>

<bundles_post_ra>
// kernel: dqn_mlp_forward.1
= control target key start
LH: loop header
LB: loop body
LE: loop exit
PB: predicated region body
PF: predicated region fallthrough
CT: control target
= control target key end

     0   :  { %10 = vsyncpa [#allocation3], 0  ;;  %s584_s0 = inlined_call_operand.vmem [shape: f32[8,8], index: 0, kind: input, shape index: {}]   ;;  %s585_s1 = inlined_call_operand.vmem [shape: f32[8,128], index: 1, kind: input, shape index: {}]   ;;  %s586_s2 = inlined_call_operand.hbm [shape: f32[128,128], index: 2, kind: input, shape index: {}]   ;;  %s587_s3 = inlined_call_operand.hbm [shape: f32[128,128], index: 3, kind: input, shape index: {}]   ;;  %s588_s4 = inlined_call_operand.vmem [shape: f32[3,128], index: 4, kind: input, shape index: {}]   ;;  %s589_s5 = inlined_call_operand.vmem [shape: f32[8,128], index: 5, kind: output, shape index: {}]  }
   0x1   :  { %11 = vsyncpa [#allocation5], 0  ;;  %s485_s18 = smov [#allocation2]  }
   0x2   :  { %s21_s19 = sshll.u32 %s485_s18, 4  ;;  %s22_s19 = int_to_ptr.vmem [resolvable:$true] %s21_s19 }
   0x3   :  { %s449_s20 = scalar_lea.vmem %s22_s19, 2048  ;;  %p454_p1 = scmp.lt.s32.totalorder %s22_s19, %s22_s19 }
   0x4   :  { %p450_p0 = scmp.ne.s32.totalorder %s22_s19, %s449_s20  ;;  %p455_p2 = scmp.lt.s32.totalorder %s449_s20, %s449_s20 }
   0x6   :  { %p456_p3 = por %p455_p2, %p454_p1 }
   0x8   :  { %p457_p4 = pnand %p456_p3, %p450_p0 }
   0xa   :  { %460 = shalt.err (!%p457_p4)
}
   0xb   :  { %s486_s21 = smov 128   ;;  %s487_s22 = smov 8  }
   0xc   :  { %27 = dma.hbm_to_vmem [thread:$0]  %s586_s2, 2048, %s22_s19, [#allocation3], %s486_s21, %s486_s21, %s487_s22  }
   0xd   :  { %s488_s25 = smov [#allocation4]  }
   0xe   :  { %s33_s26 = sshll.u32 %s488_s25, 4  ;;  %s34_s26 = int_to_ptr.vmem [resolvable:$true] %s33_s26 }
   0xf   :  { %s469_s27 = scalar_lea.vmem %s34_s26, 2048  ;;  %p474_p6 = scmp.lt.s32.totalorder %s34_s26, %s34_s26 }
  0x10   :  { %p470_p5 = scmp.ne.s32.totalorder %s34_s26, %s469_s27  ;;  %p475_p7 = scmp.lt.s32.totalorder %s469_s27, %s469_s27 }
  0x12   :  { %p476_p8 = por %p475_p7, %p474_p6 }
  0x14   :  { %p477_p9 = pnand %p476_p8, %p470_p5 }
  0x16   :  { %480 = shalt.err (!%p477_p9)
}
  0x17   :  { %39 = dma.hbm_to_vmem [thread:$0]  %s587_s3, 2048, %s34_s26, [#allocation5], %s486_s21, %s486_s21, %s487_s22  }
  0x18   :  { %481 = dma.done.wait [#allocation3], 2048  }
  0x19   :  { %482 = vsyncadd [#allocation3], 4294965248 }
  0x1a   :  { %483 = dma.done.wait [#allocation5], 2048  }
  0x1b   :  { %484 = vsyncadd [#allocation5], 4294965248  ;;  %v489_v0 = vmov 0.0   ;;  %vm490_vm0 = vmmov 0   ;;  %vm57_vm1 = vcmask 64512   ;;  %v52_v1 = vld [vmem:[%s585_s1] sm:$0xff] }
  0x1c   :  { %360 = vmatprep.subr.mxu0 %v489_v0  ;;  %362 = vmatprep.mubr.msk.f32.mxu0 %vm490_vm0, %v489_v0  ;;  %v51_v2 = vld [vmem:[%s584_s0] sm:$0xff]  ;;  %v147_v3 = vld [vmem:[#allocation2 + $0x78] sm:$0xff]  ;;  %v146_v4 = vld [vmem:[#allocation2 + $0x70] sm:$0xff] }
  0x1d   :  { %365 = vmatprep.subr.mxu1 %v489_v0  ;;  %397 = vmatprep.mubr.msk.f32.mxu1 %vm490_vm0, %v489_v0  ;;  %v145_v5 = vld [vmem:[#allocation2 + $0x68] sm:$0xff]  ;;  %v144_v6 = vld [vmem:[#allocation2 + $0x60] sm:$0xff]  ;;  %v143_v7 = vld [vmem:[#allocation2 + $0x58] sm:$0xff] }
  0x1e   :  { %361 = vmatpush3.msra.mxu0 %v52_v1  ;;  %366 = vmatpush3.msra.mxu1 %v147_v3  ;;  %v142_v8 = vld [vmem:[#allocation2 + $0x50] sm:$0xff]  ;;  %v141_v9 = vld [vmem:[#allocation2 + $0x48] sm:$0xff]  ;;  %v140_v10 = vld [vmem:[#allocation2 + $0x40] sm:$0xff] }
  0x1f   :  { %363 = vmatmul.mubr.msk.f32.vlgmr.msra.gmra.mxu0 %vm57_vm1, %v51_v2  ;;  %367 = vmatprep.subr.mxu1 %v489_v0  ;;  %v139_v11 = vld [vmem:[#allocation2 + $0x38] sm:$0xff]  ;;  %v138_v12 = vld [vmem:[#allocation2 + $0x30] sm:$0xff]  ;;  %v137_v13 = vld [vmem:[#allocation2 + $0x28] sm:$0xff] }
  0x20   :  { %368 = vmatpush3.msra.mxu1 %v146_v4  ;;  %400 = vmatprep.subr.mxu0 %v489_v0  ;;  %v136_v14 = vld [vmem:[#allocation2 + $0x20] sm:$0xff]  ;;  %v135_v15 = vld [vmem:[#allocation2 + $0x18] sm:$0xff]  ;;  %v134_v16 = vld [vmem:[#allocation2 + $0x10] sm:$0xff] }
  0x21   :  { %369 = vmatprep.subr.mxu1 %v489_v0  ;;  %432 = vmatprep.mubr.msk.f32.mxu0 %vm490_vm0, %v489_v0  ;;  %v133_v17 = vld [vmem:[#allocation2 + $0x8] sm:$0xff]  ;;  %v132_v18 = vld [vmem:[#allocation2] sm:$0xff]  ;;  %v238_v19 = vld [vmem:[#allocation4 + $0x78] sm:$0xff] }
  0x22   :  { %370 = vmatpush3.msra.mxu1 %v145_v5  ;;  %v237_v20 = vld [vmem:[#allocation4 + $0x70] sm:$0xff]  ;;  %401 = vmatpush3.msra.mxu0 %v238_v19  ;;  %v236_v21 = vld [vmem:[#allocation4 + $0x68] sm:$0xff]  ;;  %v235_v22 = vld [vmem:[#allocation4 + $0x60] sm:$0xff] }
  0x23   :  { %371 = vmatprep.subr.mxu1 %v489_v0  ;;  %402 = vmatprep.subr.mxu0 %v489_v0  ;;  %v234_v23 = vld [vmem:[#allocation4 + $0x58] sm:$0xff]  ;;  %v233_v24 = vld [vmem:[#allocation4 + $0x50] sm:$0xff]  ;;  %v232_v25 = vld [vmem:[#allocation4 + $0x48] sm:$0xff] }
  0x24   :  { %372 = vmatpush3.msra.mxu1 %v144_v6  ;;  %403 = vmatpush3.msra.mxu0 %v237_v20  ;;  %v231_v26 = vld [vmem:[#allocation4 + $0x40] sm:$0xff]  ;;  %v230_v27 = vld [vmem:[#allocation4 + $0x38] sm:$0xff]  ;;  %v229_v28 = vld [vmem:[#allocation4 + $0x30] sm:$0xff] }
  0x25   :  { %373 = vmatprep.subr.mxu1 %v489_v0  ;;  %404 = vmatprep.subr.mxu0 %v489_v0  ;;  %v228_v29 = vld [vmem:[#allocation4 + $0x28] sm:$0xff]  ;;  %v227_v30 = vld [vmem:[#allocation4 + $0x20] sm:$0xff]  ;;  %v226_v31 = vld [vmem:[#allocation4 + $0x18] sm:$0xff] }
  0x26   :  { %374 = vmatpush3.msra.mxu1 %v143_v7  ;;  %405 = vmatpush3.msra.mxu0 %v236_v21  ;;  %v320_v32 = vld [vmem:[%s588_s4] ss:$0 sm:$0xff]  ;;  %v225_v37 = vld [vmem:[#allocation4 + $0x10] sm:$0xff]  ;;  %v224_v38 = vld [vmem:[#allocation4 + $0x8] sm:$0xff] }
  0x27   :  { %375 = vmatprep.subr.mxu1 %v489_v0  ;;  %406 = vmatprep.subr.mxu0 %v489_v0  ;;  %v223_v39 = vld [vmem:[#allocation4] sm:$0xff] }
  0x28   :  { %376 = vmatpush3.msra.mxu1 %v142_v8  ;;  %407 = vmatpush3.msra.mxu0 %v235_v22  ;;  %v322_v40 = vld [vmem:[%s588_s4 + $0x1] ss:$0 sm:$0xff]  ;;  %v323_v45 = vld [vmem:[%s588_s4 + $0x2] ss:$0 sm:$0xff] }
  0x29   :  { %377 = vmatprep.subr.mxu1 %v489_v0  ;;  %408 = vmatprep.subr.mxu0 %v489_v0 }
  0x2a   :  { %378 = vmatpush3.msra.mxu1 %v141_v9  ;;  %409 = vmatpush3.msra.mxu0 %v234_v23 }
  0x2b   :  { %379 = vmatprep.subr.mxu1 %v489_v0  ;;  %410 = vmatprep.subr.mxu0 %v489_v0 }
  0x2c   :  { %380 = vmatpush3.msra.mxu1 %v140_v10  ;;  %411 = vmatpush3.msra.mxu0 %v233_v24 }
  0x2d   :  { %381 = vmatprep.subr.mxu1 %v489_v0  ;;  %412 = vmatprep.subr.mxu0 %v489_v0 }
  0x2e   :  { %382 = vmatpush3.msra.mxu1 %v139_v11  ;;  %413 = vmatpush3.msra.mxu0 %v232_v25 }
  0x2f   :  { %383 = vmatprep.subr.mxu1 %v489_v0  ;;  %414 = vmatprep.subr.mxu0 %v489_v0 }
  0x30   :  { %384 = vmatpush3.msra.mxu1 %v138_v12  ;;  %415 = vmatpush3.msra.mxu0 %v231_v26 }
  0x31   :  { %385 = vmatprep.subr.mxu1 %v489_v0  ;;  %416 = vmatprep.subr.mxu0 %v489_v0 }
  0x32   :  { %386 = vmatpush3.msra.mxu1 %v137_v13  ;;  %417 = vmatpush3.msra.mxu0 %v230_v27 }
  0x33   :  { %387 = vmatprep.subr.mxu1 %v489_v0  ;;  %418 = vmatprep.subr.mxu0 %v489_v0 }
  0x34   :  { %388 = vmatpush3.msra.mxu1 %v136_v14  ;;  %419 = vmatpush3.msra.mxu0 %v229_v28 }
  0x35   :  { %389 = vmatprep.subr.mxu1 %v489_v0  ;;  %420 = vmatprep.subr.mxu0 %v489_v0 }
  0x36   :  { %390 = vmatpush3.msra.mxu1 %v135_v15  ;;  %421 = vmatpush3.msra.mxu0 %v228_v29 }
  0x37   :  { %391 = vmatprep.subr.mxu1 %v489_v0  ;;  %422 = vmatprep.subr.mxu0 %v489_v0 }
  0x38   :  { %392 = vmatpush3.msra.mxu1 %v134_v16  ;;  %423 = vmatpush3.msra.mxu0 %v227_v30 }
  0x39   :  { %393 = vmatprep.subr.mxu1 %v489_v0  ;;  %424 = vmatprep.subr.mxu0 %v489_v0 }
  0x3a   :  { %394 = vmatpush3.msra.mxu1 %v133_v17  ;;  %425 = vmatpush3.msra.mxu0 %v226_v31 }
  0x3b   :  { %395 = vmatprep.subr.mxu1 %v489_v0  ;;  %426 = vmatprep.subr.mxu0 %v489_v0 }
  0x3c   :  { %396 = vmatpush3.msra.mxu1 %v132_v18  ;;  %427 = vmatpush3.msra.mxu0 %v225_v37 }
  0x3d   :  { %428 = vmatprep.subr.mxu0 %v489_v0 }
  0x3e   :  { %429 = vmatpush3.msra.mxu0 %v224_v38 }
  0x3f   :  { %430 = vmatprep.subr.mxu0 %v489_v0 }
  0x40   :  { %431 = vmatpush3.msra.mxu0 %v223_v39 }
  0xdf   :  { %v127_v33 = vpop.f32.mrf.mxu0 }
  0xe0   :  { %v128_v34 = vadd.f32 %v320_v32, %v127_v33 }
  0xe1   :  { %v364_v35 = vpop.f32.mrf.mxu0 }
  0xe2   :  { %v131_v36 = vmax.f32 %v128_v34, 0.0 }
  0xe4   :  { %398 = vmatmul.mubr.f32.vlgmr.msra.gmra.mxu1 %v131_v36 }
 0x1a4   :  { %v218_v41 = vpop.f32.mrf.mxu1 }
 0x1a5   :  { %v219_v42 = vadd.f32 %v322_v40, %v218_v41 }
 0x1a6   :  { %v399_v43 = vpop.f32.mrf.mxu1 }
 0x1a7   :  { %v222_v44 = vmax.f32 %v219_v42, 0.0 }
 0x1a9   :  { %433 = vmatmul.mubr.f32.vlgmr.msra.gmra.mxu0 %v222_v44 }
 0x269   :  { %v309_v46 = vpop.f32.mrf.mxu0 }
 0x26a   :  { %v310_v47 = vadd.f32 %v323_v45, %v309_v46 }
 0x26b   :  { %v434_v48 = vpop.f32.mrf.mxu0 }
 0x26c   :  { %313 = vst [vmem:[%s589_s5] sm:$0xff] %v310_v47 }
 0x26d   :  { %318 = vsyncpa [#allocation3], 1 }
 0x26e   :  { %319 = vsyncpa [#allocation5], 1 }

</bundles_post_ra>
